<compile_context>
chip_gen: v6e
topology: v6e:2x2x1
jax: 0.10.0
libtpu: 0.0.40
codegen_flags: <defaults>
</compile_context>

<pallas_src>
import jax
import jax.numpy as jnp
from jax.experimental import pallas as pl
from jax.experimental.pallas import tpu as pltpu


def _make_kernel(H, W, Cb, B, use_mxu):
    HW = H * W

    def kernel(x_ref, w1_ref, w2_ref, p_ref, out_ref):
        # ---- hoisted (1, HW) boundary masks (lane-position only) ----------
        pos = jax.lax.broadcasted_iota(jnp.int32, (1, HW), 1)
        col = pos % W
        not_left = col > 0
        not_right = col < (W - 1)
        not_top = pos >= W
        not_bottom = pos < (HW - W)
        row_masks = (not_top, None, not_bottom)     # indexed by dy
        col_masks = (not_left, None, not_right)     # indexed by dx

        # ---- weights / packed per-channel params (loaded once per step) ---
        w1 = w1_ref[...]                             # (Cb, Cb) f32 or bf16
        w2 = w2_ref[...]
        P = p_ref[...]                               # (Cb, 16) f32
        s1, b1 = P[:, 0:1], P[:, 1:2]
        s2, b2 = P[:, 2:3], P[:, 3:4]
        s3, b3 = P[:, 4:5], P[:, 5:6]
        # depthwise weights live in columns 6..14 (row-major 3x3)

        def conv1x1(w, x):
            if use_mxu:
                # bf16 operands, f32 accumulation on the MXU.
                return jnp.dot(w, x.astype(jnp.bfloat16),
                               preferred_element_type=jnp.float32)
            # Tiny Cb: Cb broadcast multiply-adds on the VPU, exact f32.
            acc = w[:, 0:1] * x[0:1, :]
            for c in range(1, Cb):
                acc = acc + w[:, c:c + 1] * x[c:c + 1, :]
            return acc

        for b in range(B):                           # static unroll over block
            x2 = x_ref[b, Cb:, :]                    # (Cb, HW)

            # stage 1: 1x1 conv -> BN -> ReLU
            y = jnp.maximum(conv1x1(w1, x2) * s1 + b1, 0.0)

            # stage 2: depthwise 3x3, stride 1, pad 1 -> BN.
            # Taps come from XLU lane rotations (pltpu.roll) + (1,HW) masks;
            # roll semantics: out[p] = y[(p - shift) mod HW], so shift = -off
            # gives out[p] = y[p + off] with wrap, which the masks zero out.
            acc = y * P[:, 10:11]                    # center tap (dy=1, dx=1)
            for dy in range(3):
                for dx in range(3):
                    if dy == 1 and dx == 1:
                        continue
                    off = (dy - 1) * W + (dx - 1)
                    t = pltpu.roll(y, shift=(-off) % HW, axis=1)
                    mask = row_masks[dy]
                    if col_masks[dx] is not None:
                        mask = col_masks[dx] if mask is None else (mask & col_masks[dx])
                    t = jnp.where(mask, t, 0.0)
                    k = 3 * dy + dx
                    acc = acc + t * P[:, 6 + k:7 + k]
            z = acc * s2 + b2

            # stage 3: 1x1 conv -> BN -> ReLU
            o2 = jnp.maximum(conv1x1(w2, z) * s3 + b3, 0.0)

            # Channel shuffle folded into the output layout:
            #   out[b, i, 0:HW]    -> shuffled channel 2*i     (= x1[i])
            #   out[b, i, HW:2*HW] -> shuffled channel 2*i + 1 (= o2[i])
            # Both stores are lane-dense and 128-aligned.
            out_ref[b, :, 0:HW] = x_ref[b, :Cb, :].astype(out_ref.dtype)
            out_ref[b, :, HW:2 * HW] = o2.astype(out_ref.dtype)

    return kernel


def _pick_block_b(N, C, HW, vmem_budget_bytes=16 << 20):
    """Images per grid step: as many as fit a conservative VMEM budget."""
    bytes_per_img = 2 * C * HW * 4          # f32 input tile + equally sized output tile
    max_b = max(1, vmem_budget_bytes // (2 * bytes_per_img))   # 2x: double buffering
    block_b = 1
    for d in range(1, N + 1):
        if N % d == 0 and d <= max_b:
            block_b = d
    # If the whole batch fits in one step but the work is big enough to
    # amortize per-step overhead, split into >= 2 steps so both v7x
    # TensorCores get work via dimension_semantics=("parallel",).
    if block_b == N and N % 2 == 0 and bytes_per_img * N > (4 << 20):
        block_b = N // 2
    return block_b


def shufflev2_block_stride1(x_nchw, params, *, block_b=None):
    """ShuffleV2Block forward (stride == 1, inp == oup). x_nchw: (N, C, H, W)."""
    N, C, H, W = x_nchw.shape
    Cb = C // 2
    HW = H * W
    w1, s1, b1, wdw, s2, b2, w2, s3, b3 = params

    use_mxu = Cb >= 16                      # tiny contractions stay f32 on the VPU
    if block_b is None:
        block_b = _pick_block_b(N, C, HW)
    assert N % block_b == 0, "batch must be divisible by block_b"

    x_flat = x_nchw.reshape(N, C, HW)       # free reshape, no HBM transpose

    # Pack the seven small per-channel params into one (Cb, 16) f32 slab:
    # [s1, b1, s2, b2, s3, b3, wdw(9), pad].
    P = jnp.concatenate(
        [s1.reshape(Cb, 1), b1.reshape(Cb, 1),
         s2.reshape(Cb, 1), b2.reshape(Cb, 1),
         s3.reshape(Cb, 1), b3.reshape(Cb, 1),
         wdw.reshape(Cb, 9),
         jnp.zeros((Cb, 1), jnp.float32)], axis=1)

    wdt = jnp.bfloat16 if use_mxu else jnp.float32
    w1k = w1.astype(wdt)                    # pre-cast once in the wrapper
    w2k = w2.astype(wdt)

    # Explicit VMEM limit: double-buffered in/out tiles + params + headroom.
    tile_bytes = block_b * 2 * C * HW * 4
    param_bytes = (Cb * 16 + 2 * Cb * Cb) * 4
    vmem_limit = int(min(max(2 * tile_bytes + 4 * param_bytes + (8 << 20),
                             16 << 20), 60 << 20))

    out = pl.pallas_call(
        _make_kernel(H, W, Cb, block_b, use_mxu),
        out_shape=jax.ShapeDtypeStruct((N, Cb, 2 * HW), jnp.float32),
        grid=(N // block_b,),
        in_specs=[pl.BlockSpec((block_b, C, HW), lambda n: (n, 0, 0)),
                  pl.BlockSpec((Cb, Cb), lambda n: (0, 0)),
                  pl.BlockSpec((Cb, Cb), lambda n: (0, 0)),
                  pl.BlockSpec((Cb, 16), lambda n: (0, 0))],
        out_specs=pl.BlockSpec((block_b, Cb, 2 * HW), lambda n: (n, 0, 0)),
        compiler_params=pltpu.CompilerParams(
            dimension_semantics=("parallel",),
            vmem_limit_bytes=vmem_limit),
    )(x_flat, w1k, w2k, P)

    # (N, Cb, 2*HW) -> (N, 2*Cb, H, W) is a pure, free reshape that realizes
    # channel_shuffle(cat([x1, branch2(x2)]), 2):
    #   channel 2*i   <- x1[i]   (first HW of row i)
    #   channel 2*i+1 <- o2[i]   (second HW of row i)
    return out.reshape(N, 2 * Cb, H, W)


def _reference(x, params):
    """Pure-JAX f32 reference of the same forward pass (NCHW)."""
    N, C, H, W = x.shape
    Cb = C // 2
    w1, s1, b1, wdw, s2, b2, w2, s3, b3 = params
    x1, x2 = x[:, :Cb], x[:, Cb:]

    def bn(v, s, b):
        return v * s.reshape(1, Cb, 1, 1) + b.reshape(1, Cb, 1, 1)

    hp = jax.lax.Precision.HIGHEST
    y = jnp.maximum(bn(jnp.einsum('oc,nchw->nohw', w1, x2, precision=hp), s1, b1), 0.0)
    yp = jnp.pad(y, ((0, 0), (0, 0), (1, 1), (1, 1)))
    acc = jnp.zeros_like(y)
    for dy in range(3):
        for dx in range(3):
            acc = acc + yp[:, :, dy:dy + H, dx:dx + W] * wdw[:, dy, dx].reshape(1, Cb, 1, 1)
    z = bn(acc, s2, b2)
    o2 = jnp.maximum(bn(jnp.einsum('oc,nchw->nohw', w2, z, precision=hp), s3, b3), 0.0)
    cat = jnp.concatenate([x1, o2], axis=1)
    return cat.reshape(N, 2, Cb, H, W).transpose(0, 2, 1, 3, 4).reshape(N, 2 * Cb, H, W)


if __name__ == "__main__":
    # Module config: inp=4, oup=4, stride=1  =>  branch_features = 2
    N, inp, H, W = 2, 4, 16, 16
    oup = inp
    Cb = oup // 2

    key = jax.random.PRNGKey(0)
    ks = jax.random.split(key, 16)
    x = jax.random.normal(ks[0], (N, inp, H, W), jnp.float32)

    def bn_fold(kg, kb, km, kv, c):
        gamma = 1.0 + 0.1 * jax.random.normal(kg, (c,), jnp.float32)
        beta = 0.1 * jax.random.normal(kb, (c,), jnp.float32)
        mean = 0.1 * jax.random.normal(km, (c,), jnp.float32)
        var = jax.random.uniform(kv, (c,), jnp.float32, minval=0.5, maxval=1.5)
        scale = gamma / jnp.sqrt(var + 1e-5)
        bias = beta - mean * scale
        return scale, bias

    # 1x1 conv weights stored like PyTorch: (Cout, Cin); depthwise: (C, 3, 3).
    w1 = 0.5 * jax.random.normal(ks[1], (Cb, Cb), jnp.float32)
    s1, b1 = bn_fold(ks[2], ks[3], ks[4], ks[5], Cb)
    wdw = 0.5 * jax.random.normal(ks[6], (Cb, 3, 3), jnp.float32)
    s2, b2 = bn_fold(ks[7], ks[8], ks[9], ks[10], Cb)
    w2 = 0.5 * jax.random.normal(ks[11], (Cb, Cb), jnp.float32)
    s3, b3 = bn_fold(ks[12], ks[13], ks[14], ks[15], Cb)
    params = (w1, s1, b1, wdw, s2, b2, w2, s3, b3)

    out = jax.block_until_ready(shufflev2_block_stride1(x, params))
    ref = _reference(x, params)

    assert out.shape == (N, oup, H, W), out.shape
    # Tiny-Cb path keeps everything in f32 (no bf16 MXU casts) -> tight tolerance.
    assert jnp.allclose(out, ref, atol=1e-3, rtol=1e-3), \
        float(jnp.max(jnp.abs(out - ref)))
    print("KERNEL_OK")
</pallas_src>

<mosaic_0001>
module attributes {stable_mosaic.version = 11 : i64} {
  func.func @kernel(%arg0: i32, %arg1: memref<2x4x256xf32, #tpu.memory_space<vmem>>, %arg2: memref<2x2xf32, #tpu.memory_space<vmem>>, %arg3: memref<2x2xf32, #tpu.memory_space<vmem>>, %arg4: memref<2x16xf32, #tpu.memory_space<vmem>>, %arg5: memref<2x2x512xf32, #tpu.memory_space<vmem>>) attributes {dimension_semantics = [#tpu.dimension_semantics<parallel>], iteration_bounds = array<i64: 1>, scalar_prefetch = 0 : i64, scratch_operands = 0 : i64, tpu.core_type = #tpu.core_type<tc>, window_params = [{transform_indices = @transform_0, window_bounds = array<i64: 2, 4, 256>}, {pipeline_mode = #tpu.pipeline_mode<synchronous>, transform_indices = @transform_1, window_bounds = array<i64: 2, 2>}, {pipeline_mode = #tpu.pipeline_mode<synchronous>, transform_indices = @transform_2, window_bounds = array<i64: 2, 2>}, {pipeline_mode = #tpu.pipeline_mode<synchronous>, transform_indices = @transform_3, window_bounds = array<i64: 2, 16>}, {transform_indices = @transform_4, window_bounds = array<i64: 2, 2, 512>}]} {
    %0 = tpu.iota {dimensions = array<i32: 1>} : vector<1x256xi32>
    %c16_i32 = arith.constant 16 : i32
    %c0_i32 = arith.constant 0 : i32
    %1 = arith.cmpi eq, %c16_i32, %c0_i32 : i32
    %c1_i32 = arith.constant 1 : i32
    %2 = arith.select %1, %c1_i32, %c16_i32 : i32
    %3 = vector.broadcast %2 : i32 to vector<1x256xi32>
    %4 = arith.remsi %0, %3 : vector<1x256xi32>
    %c0_i32_0 = arith.constant 0 : i32
    %5 = vector.broadcast %c0_i32_0 : i32 to vector<1x256xi32>
    %6 = arith.cmpi ne, %4, %5 : vector<1x256xi32>
    %c0_i32_1 = arith.constant 0 : i32
    %7 = vector.broadcast %c0_i32_1 : i32 to vector<1x256xi32>
    %8 = arith.cmpi slt, %4, %7 : vector<1x256xi32>
    %c0_i32_2 = arith.constant 0 : i32
    %9 = arith.cmpi slt, %2, %c0_i32_2 : i32
    %10 = vector.broadcast %9 : i1 to vector<1x256xi1>
    %11 = vector.broadcast %10 : vector<1x256xi1> to vector<1x256xi1>
    %12 = arith.xori %8, %11 : vector<1x256xi1>
    %13 = arith.andi %12, %6 : vector<1x256xi1>
    %14 = vector.broadcast %2 : i32 to vector<1x256xi32>
    %15 = arith.addi %4, %14 : vector<1x256xi32>
    %16 = arith.select %13, %15, %4 : vector<1x256xi1>, vector<1x256xi32>
    %c0_i32_3 = arith.constant 0 : i32
    %17 = vector.broadcast %c0_i32_3 : i32 to vector<1x256xi32>
    %18 = arith.cmpi sgt, %16, %17 : vector<1x256xi32>
    %c15_i32 = arith.constant 15 : i32
    %19 = vector.broadcast %c15_i32 : i32 to vector<1x256xi32>
    %20 = arith.cmpi slt, %16, %19 : vector<1x256xi32>
    %c16_i32_4 = arith.constant 16 : i32
    %21 = vector.broadcast %c16_i32_4 : i32 to vector<1x256xi32>
    %22 = arith.cmpi sge, %0, %21 : vector<1x256xi32>
    %c240_i32 = arith.constant 240 : i32
    %23 = vector.broadcast %c240_i32 : i32 to vector<1x256xi32>
    %24 = arith.cmpi slt, %0, %23 : vector<1x256xi32>
    %c0 = arith.constant 0 : index
    %c0_5 = arith.constant 0 : index
    %25 = vector.load %arg2[%c0, %c0_5] : memref<2x2xf32, #tpu.memory_space<vmem>>, vector<2x2xf32>
    %c0_6 = arith.constant 0 : index
    %c0_7 = arith.constant 0 : index
    %26 = vector.load %arg3[%c0_6, %c0_7] : memref<2x2xf32, #tpu.memory_space<vmem>>, vector<2x2xf32>
    %c0_8 = arith.constant 0 : index
    %c0_9 = arith.constant 0 : index
    %27 = vector.load %arg4[%c0_8, %c0_9] : memref<2x16xf32, #tpu.memory_space<vmem>>, vector<2x16xf32>
    %28 = vector.extract_strided_slice %27 {offsets = [0, 0], sizes = [2, 1], strides = [1, 1]} : vector<2x16xf32> to vector<2x1xf32>
    %29 = vector.extract_strided_slice %27 {offsets = [0, 1], sizes = [2, 1], strides = [1, 1]} : vector<2x16xf32> to vector<2x1xf32>
    %30 = vector.extract_strided_slice %27 {offsets = [0, 2], sizes = [2, 1], strides = [1, 1]} : vector<2x16xf32> to vector<2x1xf32>
    %31 = vector.extract_strided_slice %27 {offsets = [0, 3], sizes = [2, 1], strides = [1, 1]} : vector<2x16xf32> to vector<2x1xf32>
    %32 = vector.extract_strided_slice %27 {offsets = [0, 4], sizes = [2, 1], strides = [1, 1]} : vector<2x16xf32> to vector<2x1xf32>
    %33 = vector.extract_strided_slice %27 {offsets = [0, 5], sizes = [2, 1], strides = [1, 1]} : vector<2x16xf32> to vector<2x1xf32>
    %c0_10 = arith.constant 0 : index
    %c2 = arith.constant 2 : index
    %c0_11 = arith.constant 0 : index
    %34 = vector.load %arg1[%c0_10, %c2, %c0_11] : memref<2x4x256xf32, #tpu.memory_space<vmem>>, vector<1x2x256xf32>
    %35 = vector.shape_cast %34 : vector<1x2x256xf32> to vector<2x256xf32>
    %36 = vector.extract_strided_slice %25 {offsets = [0, 0], sizes = [2, 1], strides = [1, 1]} : vector<2x2xf32> to vector<2x1xf32>
    %37 = vector.extract_strided_slice %35 {offsets = [0, 0], sizes = [1, 256], strides = [1, 1]} : vector<2x256xf32> to vector<1x256xf32>
    %38 = vector.broadcast %36 : vector<2x1xf32> to vector<2x256xf32>
    %39 = vector.broadcast %37 : vector<1x256xf32> to vector<2x256xf32>
    %40 = arith.mulf %38, %39 : vector<2x256xf32>
    %41 = vector.extract_strided_slice %25 {offsets = [0, 1], sizes = [2, 1], strides = [1, 1]} : vector<2x2xf32> to vector<2x1xf32>
    %42 = vector.extract_strided_slice %35 {offsets = [1, 0], sizes = [1, 256], strides = [1, 1]} : vector<2x256xf32> to vector<1x256xf32>
    %43 = vector.broadcast %41 : vector<2x1xf32> to vector<2x256xf32>
    %44 = vector.broadcast %42 : vector<1x256xf32> to vector<2x256xf32>
    %45 = arith.mulf %43, %44 : vector<2x256xf32>
    %46 = arith.addf %40, %45 : vector<2x256xf32>
    %47 = vector.broadcast %28 : vector<2x1xf32> to vector<2x256xf32>
    %48 = arith.mulf %46, %47 : vector<2x256xf32>
    %49 = vector.broadcast %29 : vector<2x1xf32> to vector<2x256xf32>
    %50 = arith.addf %48, %49 : vector<2x256xf32>
    %cst = arith.constant 0.000000e+00 : f32
    %51 = vector.broadcast %cst : f32 to vector<2x256xf32>
    %52 = arith.maximumf %50, %51 : vector<2x256xf32>
    %53 = vector.extract_strided_slice %27 {offsets = [0, 10], sizes = [2, 1], strides = [1, 1]} : vector<2x16xf32> to vector<2x1xf32>
    %54 = vector.broadcast %53 : vector<2x1xf32> to vector<2x256xf32>
    %55 = arith.mulf %52, %54 : vector<2x256xf32>
    %c17_i32 = arith.constant 17 : i32
    %56 = tpu.dynamic_rotate %52 by %c17_i32 dim 1 : vector<2x256xf32>, i32 -> vector<2x256xf32>
    %57 = arith.andi %22, %18 : vector<1x256xi1>
    %cst_12 = arith.constant 0.000000e+00 : f32
    %58 = vector.shape_cast %57 : vector<1x256xi1> to vector<1x256xi1>
    %59 = vector.broadcast %58 : vector<1x256xi1> to vector<2x256xi1>
    %60 = vector.broadcast %cst_12 : f32 to vector<2x256xf32>
    %61 = arith.select %59, %56, %60 : vector<2x256xi1>, vector<2x256xf32>
    %62 = vector.extract_strided_slice %27 {offsets = [0, 6], sizes = [2, 1], strides = [1, 1]} : vector<2x16xf32> to vector<2x1xf32>
    %63 = vector.broadcast %62 : vector<2x1xf32> to vector<2x256xf32>
    %64 = arith.mulf %61, %63 : vector<2x256xf32>
    %65 = arith.addf %55, %64 : vector<2x256xf32>
    %c16_i32_13 = arith.constant 16 : i32
    %66 = tpu.dynamic_rotate %52 by %c16_i32_13 dim 1 : vector<2x256xf32>, i32 -> vector<2x256xf32>
    %cst_14 = arith.constant 0.000000e+00 : f32
    %67 = vector.shape_cast %22 : vector<1x256xi1> to vector<1x256xi1>
    %68 = vector.broadcast %67 : vector<1x256xi1> to vector<2x256xi1>
    %69 = vector.broadcast %cst_14 : f32 to vector<2x256xf32>
    %70 = arith.select %68, %66, %69 : vector<2x256xi1>, vector<2x256xf32>
    %71 = vector.extract_strided_slice %27 {offsets = [0, 7], sizes = [2, 1], strides = [1, 1]} : vector<2x16xf32> to vector<2x1xf32>
    %72 = vector.broadcast %71 : vector<2x1xf32> to vector<2x256xf32>
    %73 = arith.mulf %70, %72 : vector<2x256xf32>
    %74 = arith.addf %65, %73 : vector<2x256xf32>
    %c15_i32_15 = arith.constant 15 : i32
    %75 = tpu.dynamic_rotate %52 by %c15_i32_15 dim 1 : vector<2x256xf32>, i32 -> vector<2x256xf32>
    %76 = arith.andi %22, %20 : vector<1x256xi1>
    %cst_16 = arith.constant 0.000000e+00 : f32
    %77 = vector.shape_cast %76 : vector<1x256xi1> to vector<1x256xi1>
    %78 = vector.broadcast %77 : vector<1x256xi1> to vector<2x256xi1>
    %79 = vector.broadcast %cst_16 : f32 to vector<2x256xf32>
    %80 = arith.select %78, %75, %79 : vector<2x256xi1>, vector<2x256xf32>
    %81 = vector.extract_strided_slice %27 {offsets = [0, 8], sizes = [2, 1], strides = [1, 1]} : vector<2x16xf32> to vector<2x1xf32>
    %82 = vector.broadcast %81 : vector<2x1xf32> to vector<2x256xf32>
    %83 = arith.mulf %80, %82 : vector<2x256xf32>
    %84 = arith.addf %74, %83 : vector<2x256xf32>
    %c1_i32_17 = arith.constant 1 : i32
    %85 = tpu.dynamic_rotate %52 by %c1_i32_17 dim 1 : vector<2x256xf32>, i32 -> vector<2x256xf32>
    %cst_18 = arith.constant 0.000000e+00 : f32
    %86 = vector.shape_cast %18 : vector<1x256xi1> to vector<1x256xi1>
    %87 = vector.broadcast %86 : vector<1x256xi1> to vector<2x256xi1>
    %88 = vector.broadcast %cst_18 : f32 to vector<2x256xf32>
    %89 = arith.select %87, %85, %88 : vector<2x256xi1>, vector<2x256xf32>
    %90 = vector.extract_strided_slice %27 {offsets = [0, 9], sizes = [2, 1], strides = [1, 1]} : vector<2x16xf32> to vector<2x1xf32>
    %91 = vector.broadcast %90 : vector<2x1xf32> to vector<2x256xf32>
    %92 = arith.mulf %89, %91 : vector<2x256xf32>
    %93 = arith.addf %84, %92 : vector<2x256xf32>
    %c255_i32 = arith.constant 255 : i32
    %94 = tpu.dynamic_rotate %52 by %c255_i32 dim 1 : vector<2x256xf32>, i32 -> vector<2x256xf32>
    %cst_19 = arith.constant 0.000000e+00 : f32
    %95 = vector.shape_cast %20 : vector<1x256xi1> to vector<1x256xi1>
    %96 = vector.broadcast %95 : vector<1x256xi1> to vector<2x256xi1>
    %97 = vector.broadcast %cst_19 : f32 to vector<2x256xf32>
    %98 = arith.select %96, %94, %97 : vector<2x256xi1>, vector<2x256xf32>
    %99 = vector.extract_strided_slice %27 {offsets = [0, 11], sizes = [2, 1], strides = [1, 1]} : vector<2x16xf32> to vector<2x1xf32>
    %100 = vector.broadcast %99 : vector<2x1xf32> to vector<2x256xf32>
    %101 = arith.mulf %98, %100 : vector<2x256xf32>
    %102 = arith.addf %93, %101 : vector<2x256xf32>
    %c241_i32 = arith.constant 241 : i32
    %103 = tpu.dynamic_rotate %52 by %c241_i32 dim 1 : vector<2x256xf32>, i32 -> vector<2x256xf32>
    %104 = arith.andi %24, %18 : vector<1x256xi1>
    %cst_20 = arith.constant 0.000000e+00 : f32
    %105 = vector.shape_cast %104 : vector<1x256xi1> to vector<1x256xi1>
    %106 = vector.broadcast %105 : vector<1x256xi1> to vector<2x256xi1>
    %107 = vector.broadcast %cst_20 : f32 to vector<2x256xf32>
    %108 = arith.select %106, %103, %107 : vector<2x256xi1>, vector<2x256xf32>
    %109 = vector.extract_strided_slice %27 {offsets = [0, 12], sizes = [2, 1], strides = [1, 1]} : vector<2x16xf32> to vector<2x1xf32>
    %110 = vector.broadcast %109 : vector<2x1xf32> to vector<2x256xf32>
    %111 = arith.mulf %108, %110 : vector<2x256xf32>
    %112 = arith.addf %102, %111 : vector<2x256xf32>
    %c240_i32_21 = arith.constant 240 : i32
    %113 = tpu.dynamic_rotate %52 by %c240_i32_21 dim 1 : vector<2x256xf32>, i32 -> vector<2x256xf32>
    %cst_22 = arith.constant 0.000000e+00 : f32
    %114 = vector.shape_cast %24 : vector<1x256xi1> to vector<1x256xi1>
    %115 = vector.broadcast %114 : vector<1x256xi1> to vector<2x256xi1>
    %116 = vector.broadcast %cst_22 : f32 to vector<2x256xf32>
    %117 = arith.select %115, %113, %116 : vector<2x256xi1>, vector<2x256xf32>
    %118 = vector.extract_strided_slice %27 {offsets = [0, 13], sizes = [2, 1], strides = [1, 1]} : vector<2x16xf32> to vector<2x1xf32>
    %119 = vector.broadcast %118 : vector<2x1xf32> to vector<2x256xf32>
    %120 = arith.mulf %117, %119 : vector<2x256xf32>
    %121 = arith.addf %112, %120 : vector<2x256xf32>
    %c239_i32 = arith.constant 239 : i32
    %122 = tpu.dynamic_rotate %52 by %c239_i32 dim 1 : vector<2x256xf32>, i32 -> vector<2x256xf32>
    %123 = arith.andi %24, %20 : vector<1x256xi1>
    %cst_23 = arith.constant 0.000000e+00 : f32
    %124 = vector.shape_cast %123 : vector<1x256xi1> to vector<1x256xi1>
    %125 = vector.broadcast %124 : vector<1x256xi1> to vector<2x256xi1>
    %126 = vector.broadcast %cst_23 : f32 to vector<2x256xf32>
    %127 = arith.select %125, %122, %126 : vector<2x256xi1>, vector<2x256xf32>
    %128 = vector.extract_strided_slice %27 {offsets = [0, 14], sizes = [2, 1], strides = [1, 1]} : vector<2x16xf32> to vector<2x1xf32>
    %129 = vector.broadcast %128 : vector<2x1xf32> to vector<2x256xf32>
    %130 = arith.mulf %127, %129 : vector<2x256xf32>
    %131 = arith.addf %121, %130 : vector<2x256xf32>
    %132 = vector.broadcast %30 : vector<2x1xf32> to vector<2x256xf32>
    %133 = arith.mulf %131, %132 : vector<2x256xf32>
    %134 = vector.broadcast %31 : vector<2x1xf32> to vector<2x256xf32>
    %135 = arith.addf %133, %134 : vector<2x256xf32>
    %136 = vector.extract_strided_slice %26 {offsets = [0, 0], sizes = [2, 1], strides = [1, 1]} : vector<2x2xf32> to vector<2x1xf32>
    %137 = vector.extract_strided_slice %135 {offsets = [0, 0], sizes = [1, 256], strides = [1, 1]} : vector<2x256xf32> to vector<1x256xf32>
    %138 = vector.broadcast %136 : vector<2x1xf32> to vector<2x256xf32>
    %139 = vector.broadcast %137 : vector<1x256xf32> to vector<2x256xf32>
    %140 = arith.mulf %138, %139 : vector<2x256xf32>
    %141 = vector.extract_strided_slice %26 {offsets = [0, 1], sizes = [2, 1], strides = [1, 1]} : vector<2x2xf32> to vector<2x1xf32>
    %142 = vector.extract_strided_slice %135 {offsets = [1, 0], sizes = [1, 256], strides = [1, 1]} : vector<2x256xf32> to vector<1x256xf32>
    %143 = vector.broadcast %141 : vector<2x1xf32> to vector<2x256xf32>
    %144 = vector.broadcast %142 : vector<1x256xf32> to vector<2x256xf32>
    %145 = arith.mulf %143, %144 : vector<2x256xf32>
    %146 = arith.addf %140, %145 : vector<2x256xf32>
    %147 = vector.broadcast %32 : vector<2x1xf32> to vector<2x256xf32>
    %148 = arith.mulf %146, %147 : vector<2x256xf32>
    %149 = vector.broadcast %33 : vector<2x1xf32> to vector<2x256xf32>
    %150 = arith.addf %148, %149 : vector<2x256xf32>
    %cst_24 = arith.constant 0.000000e+00 : f32
    %151 = vector.broadcast %cst_24 : f32 to vector<2x256xf32>
    %152 = arith.maximumf %150, %151 : vector<2x256xf32>
    %c0_25 = arith.constant 0 : index
    %c0_26 = arith.constant 0 : index
    %c0_27 = arith.constant 0 : index
    %153 = vector.load %arg1[%c0_25, %c0_26, %c0_27] : memref<2x4x256xf32, #tpu.memory_space<vmem>>, vector<1x2x256xf32>
    %154 = vector.shape_cast %153 : vector<1x2x256xf32> to vector<2x256xf32>
    %c0_28 = arith.constant 0 : index
    %c0_29 = arith.constant 0 : index
    %c0_30 = arith.constant 0 : index
    %155 = vector.load %arg5[%c0_28, %c0_29, %c0_30] : memref<2x2x512xf32, #tpu.memory_space<vmem>>, vector<1x2x256xf32>
    %156 = vector.shape_cast %155 : vector<1x2x256xf32> to vector<2x256xf32>
    %157 = vector.shape_cast %154 : vector<2x256xf32> to vector<1x2x256xf32>
    tpu.vector_store %arg5[%c0_28, %c0_29, %c0_30], %157 {strides = array<i32>} : memref<2x2x512xf32, #tpu.memory_space<vmem>>, vector<1x2x256xf32>,
    %c0_31 = arith.constant 0 : index
    %c0_32 = arith.constant 0 : index
    %c256 = arith.constant 256 : index
    %158 = vector.load %arg5[%c0_31, %c0_32, %c256] : memref<2x2x512xf32, #tpu.memory_space<vmem>>, vector<1x2x256xf32>
    %159 = vector.shape_cast %158 : vector<1x2x256xf32> to vector<2x256xf32>
    %160 = vector.shape_cast %152 : vector<2x256xf32> to vector<1x2x256xf32>
    tpu.vector_store %arg5[%c0_31, %c0_32, %c256], %160 {strides = array<i32>} : memref<2x2x512xf32, #tpu.memory_space<vmem>>, vector<1x2x256xf32>,
    %c1 = arith.constant 1 : index
    %c2_33 = arith.constant 2 : index
    %c0_34 = arith.constant 0 : index
    %161 = vector.load %arg1[%c1, %c2_33, %c0_34] : memref<2x4x256xf32, #tpu.memory_space<vmem>>, vector<1x2x256xf32>
    %162 = vector.shape_cast %161 : vector<1x2x256xf32> to vector<2x256xf32>
    %163 = vector.extract_strided_slice %25 {offsets = [0, 0], sizes = [2, 1], strides = [1, 1]} : vector<2x2xf32> to vector<2x1xf32>
    %164 = vector.extract_strided_slice %162 {offsets = [0, 0], sizes = [1, 256], strides = [1, 1]} : vector<2x256xf32> to vector<1x256xf32>
    %165 = vector.broadcast %163 : vector<2x1xf32> to vector<2x256xf32>
    %166 = vector.broadcast %164 : vector<1x256xf32> to vector<2x256xf32>
    %167 = arith.mulf %165, %166 : vector<2x256xf32>
    %168 = vector.extract_strided_slice %25 {offsets = [0, 1], sizes = [2, 1], strides = [1, 1]} : vector<2x2xf32> to vector<2x1xf32>
    %169 = vector.extract_strided_slice %162 {offsets = [1, 0], sizes = [1, 256], strides = [1, 1]} : vector<2x256xf32> to vector<1x256xf32>
    %170 = vector.broadcast %168 : vector<2x1xf32> to vector<2x256xf32>
    %171 = vector.broadcast %169 : vector<1x256xf32> to vector<2x256xf32>
    %172 = arith.mulf %170, %171 : vector<2x256xf32>
    %173 = arith.addf %167, %172 : vector<2x256xf32>
    %174 = vector.broadcast %28 : vector<2x1xf32> to vector<2x256xf32>
    %175 = arith.mulf %173, %174 : vector<2x256xf32>
    %176 = vector.broadcast %29 : vector<2x1xf32> to vector<2x256xf32>
    %177 = arith.addf %175, %176 : vector<2x256xf32>
    %cst_35 = arith.constant 0.000000e+00 : f32
    %178 = vector.broadcast %cst_35 : f32 to vector<2x256xf32>
    %179 = arith.maximumf %177, %178 : vector<2x256xf32>
    %180 = vector.extract_strided_slice %27 {offsets = [0, 10], sizes = [2, 1], strides = [1, 1]} : vector<2x16xf32> to vector<2x1xf32>
    %181 = vector.broadcast %180 : vector<2x1xf32> to vector<2x256xf32>
    %182 = arith.mulf %179, %181 : vector<2x256xf32>
    %c17_i32_36 = arith.constant 17 : i32
    %183 = tpu.dynamic_rotate %179 by %c17_i32_36 dim 1 : vector<2x256xf32>, i32 -> vector<2x256xf32>
    %184 = arith.andi %22, %18 : vector<1x256xi1>
    %cst_37 = arith.constant 0.000000e+00 : f32
    %185 = vector.shape_cast %184 : vector<1x256xi1> to vector<1x256xi1>
    %186 = vector.broadcast %185 : vector<1x256xi1> to vector<2x256xi1>
    %187 = vector.broadcast %cst_37 : f32 to vector<2x256xf32>
    %188 = arith.select %186, %183, %187 : vector<2x256xi1>, vector<2x256xf32>
    %189 = vector.extract_strided_slice %27 {offsets = [0, 6], sizes = [2, 1], strides = [1, 1]} : vector<2x16xf32> to vector<2x1xf32>
    %190 = vector.broadcast %189 : vector<2x1xf32> to vector<2x256xf32>
    %191 = arith.mulf %188, %190 : vector<2x256xf32>
    %192 = arith.addf %182, %191 : vector<2x256xf32>
    %c16_i32_38 = arith.constant 16 : i32
    %193 = tpu.dynamic_rotate %179 by %c16_i32_38 dim 1 : vector<2x256xf32>, i32 -> vector<2x256xf32>
    %cst_39 = arith.constant 0.000000e+00 : f32
    %194 = vector.shape_cast %22 : vector<1x256xi1> to vector<1x256xi1>
    %195 = vector.broadcast %194 : vector<1x256xi1> to vector<2x256xi1>
    %196 = vector.broadcast %cst_39 : f32 to vector<2x256xf32>
    %197 = arith.select %195, %193, %196 : vector<2x256xi1>, vector<2x256xf32>
    %198 = vector.extract_strided_slice %27 {offsets = [0, 7], sizes = [2, 1], strides = [1, 1]} : vector<2x16xf32> to vector<2x1xf32>
    %199 = vector.broadcast %198 : vector<2x1xf32> to vector<2x256xf32>
    %200 = arith.mulf %197, %199 : vector<2x256xf32>
    %201 = arith.addf %192, %200 : vector<2x256xf32>
    %c15_i32_40 = arith.constant 15 : i32
    %202 = tpu.dynamic_rotate %179 by %c15_i32_40 dim 1 : vector<2x256xf32>, i32 -> vector<2x256xf32>
    %203 = arith.andi %22, %20 : vector<1x256xi1>
    %cst_41 = arith.constant 0.000000e+00 : f32
    %204 = vector.shape_cast %203 : vector<1x256xi1> to vector<1x256xi1>
    %205 = vector.broadcast %204 : vector<1x256xi1> to vector<2x256xi1>
    %206 = vector.broadcast %cst_41 : f32 to vector<2x256xf32>
    %207 = arith.select %205, %202, %206 : vector<2x256xi1>, vector<2x256xf32>
    %208 = vector.extract_strided_slice %27 {offsets = [0, 8], sizes = [2, 1], strides = [1, 1]} : vector<2x16xf32> to vector<2x1xf32>
    %209 = vector.broadcast %208 : vector<2x1xf32> to vector<2x256xf32>
    %210 = arith.mulf %207, %209 : vector<2x256xf32>
    %211 = arith.addf %201, %210 : vector<2x256xf32>
    %c1_i32_42 = arith.constant 1 : i32
    %212 = tpu.dynamic_rotate %179 by %c1_i32_42 dim 1 : vector<2x256xf32>, i32 -> vector<2x256xf32>
    %cst_43 = arith.constant 0.000000e+00 : f32
    %213 = vector.shape_cast %18 : vector<1x256xi1> to vector<1x256xi1>
    %214 = vector.broadcast %213 : vector<1x256xi1> to vector<2x256xi1>
    %215 = vector.broadcast %cst_43 : f32 to vector<2x256xf32>
    %216 = arith.select %214, %212, %215 : vector<2x256xi1>, vector<2x256xf32>
    %217 = vector.extract_strided_slice %27 {offsets = [0, 9], sizes = [2, 1], strides = [1, 1]} : vector<2x16xf32> to vector<2x1xf32>
    %218 = vector.broadcast %217 : vector<2x1xf32> to vector<2x256xf32>
    %219 = arith.mulf %216, %218 : vector<2x256xf32>
    %220 = arith.addf %211, %219 : vector<2x256xf32>
    %c255_i32_44 = arith.constant 255 : i32
    %221 = tpu.dynamic_rotate %179 by %c255_i32_44 dim 1 : vector<2x256xf32>, i32 -> vector<2x256xf32>
    %cst_45 = arith.constant 0.000000e+00 : f32
    %222 = vector.shape_cast %20 : vector<1x256xi1> to vector<1x256xi1>
    %223 = vector.broadcast %222 : vector<1x256xi1> to vector<2x256xi1>
    %224 = vector.broadcast %cst_45 : f32 to vector<2x256xf32>
    %225 = arith.select %223, %221, %224 : vector<2x256xi1>, vector<2x256xf32>
    %226 = vector.extract_strided_slice %27 {offsets = [0, 11], sizes = [2, 1], strides = [1, 1]} : vector<2x16xf32> to vector<2x1xf32>
    %227 = vector.broadcast %226 : vector<2x1xf32> to vector<2x256xf32>
    %228 = arith.mulf %225, %227 : vector<2x256xf32>
    %229 = arith.addf %220, %228 : vector<2x256xf32>
    %c241_i32_46 = arith.constant 241 : i32
    %230 = tpu.dynamic_rotate %179 by %c241_i32_46 dim 1 : vector<2x256xf32>, i32 -> vector<2x256xf32>
    %231 = arith.andi %24, %18 : vector<1x256xi1>
    %cst_47 = arith.constant 0.000000e+00 : f32
    %232 = vector.shape_cast %231 : vector<1x256xi1> to vector<1x256xi1>
    %233 = vector.broadcast %232 : vector<1x256xi1> to vector<2x256xi1>
    %234 = vector.broadcast %cst_47 : f32 to vector<2x256xf32>
    %235 = arith.select %233, %230, %234 : vector<2x256xi1>, vector<2x256xf32>
    %236 = vector.extract_strided_slice %27 {offsets = [0, 12], sizes = [2, 1], strides = [1, 1]} : vector<2x16xf32> to vector<2x1xf32>
    %237 = vector.broadcast %236 : vector<2x1xf32> to vector<2x256xf32>
    %238 = arith.mulf %235, %237 : vector<2x256xf32>
    %239 = arith.addf %229, %238 : vector<2x256xf32>
    %c240_i32_48 = arith.constant 240 : i32
    %240 = tpu.dynamic_rotate %179 by %c240_i32_48 dim 1 : vector<2x256xf32>, i32 -> vector<2x256xf32>
    %cst_49 = arith.constant 0.000000e+00 : f32
    %241 = vector.shape_cast %24 : vector<1x256xi1> to vector<1x256xi1>
    %242 = vector.broadcast %241 : vector<1x256xi1> to vector<2x256xi1>
    %243 = vector.broadcast %cst_49 : f32 to vector<2x256xf32>
    %244 = arith.select %242, %240, %243 : vector<2x256xi1>, vector<2x256xf32>
    %245 = vector.extract_strided_slice %27 {offsets = [0, 13], sizes = [2, 1], strides = [1, 1]} : vector<2x16xf32> to vector<2x1xf32>
    %246 = vector.broadcast %245 : vector<2x1xf32> to vector<2x256xf32>
    %247 = arith.mulf %244, %246 : vector<2x256xf32>
    %248 = arith.addf %239, %247 : vector<2x256xf32>
    %c239_i32_50 = arith.constant 239 : i32
    %249 = tpu.dynamic_rotate %179 by %c239_i32_50 dim 1 : vector<2x256xf32>, i32 -> vector<2x256xf32>
    %250 = arith.andi %24, %20 : vector<1x256xi1>
    %cst_51 = arith.constant 0.000000e+00 : f32
    %251 = vector.shape_cast %250 : vector<1x256xi1> to vector<1x256xi1>
    %252 = vector.broadcast %251 : vector<1x256xi1> to vector<2x256xi1>
    %253 = vector.broadcast %cst_51 : f32 to vector<2x256xf32>
    %254 = arith.select %252, %249, %253 : vector<2x256xi1>, vector<2x256xf32>
    %255 = vector.extract_strided_slice %27 {offsets = [0, 14], sizes = [2, 1], strides = [1, 1]} : vector<2x16xf32> to vector<2x1xf32>
    %256 = vector.broadcast %255 : vector<2x1xf32> to vector<2x256xf32>
    %257 = arith.mulf %254, %256 : vector<2x256xf32>
    %258 = arith.addf %248, %257 : vector<2x256xf32>
    %259 = vector.broadcast %30 : vector<2x1xf32> to vector<2x256xf32>
    %260 = arith.mulf %258, %259 : vector<2x256xf32>
    %261 = vector.broadcast %31 : vector<2x1xf32> to vector<2x256xf32>
    %262 = arith.addf %260, %261 : vector<2x256xf32>
    %263 = vector.extract_strided_slice %26 {offsets = [0, 0], sizes = [2, 1], strides = [1, 1]} : vector<2x2xf32> to vector<2x1xf32>
    %264 = vector.extract_strided_slice %262 {offsets = [0, 0], sizes = [1, 256], strides = [1, 1]} : vector<2x256xf32> to vector<1x256xf32>
    %265 = vector.broadcast %263 : vector<2x1xf32> to vector<2x256xf32>
    %266 = vector.broadcast %264 : vector<1x256xf32> to vector<2x256xf32>
    %267 = arith.mulf %265, %266 : vector<2x256xf32>
    %268 = vector.extract_strided_slice %26 {offsets = [0, 1], sizes = [2, 1], strides = [1, 1]} : vector<2x2xf32> to vector<2x1xf32>
    %269 = vector.extract_strided_slice %262 {offsets = [1, 0], sizes = [1, 256], strides = [1, 1]} : vector<2x256xf32> to vector<1x256xf32>
    %270 = vector.broadcast %268 : vector<2x1xf32> to vector<2x256xf32>
    %271 = vector.broadcast %269 : vector<1x256xf32> to vector<2x256xf32>
    %272 = arith.mulf %270, %271 : vector<2x256xf32>
    %273 = arith.addf %267, %272 : vector<2x256xf32>
    %274 = vector.broadcast %32 : vector<2x1xf32> to vector<2x256xf32>
    %275 = arith.mulf %273, %274 : vector<2x256xf32>
    %276 = vector.broadcast %33 : vector<2x1xf32> to vector<2x256xf32>
    %277 = arith.addf %275, %276 : vector<2x256xf32>
    %cst_52 = arith.constant 0.000000e+00 : f32
    %278 = vector.broadcast %cst_52 : f32 to vector<2x256xf32>
    %279 = arith.maximumf %277, %278 : vector<2x256xf32>
    %c1_53 = arith.constant 1 : index
    %c0_54 = arith.constant 0 : index
    %c0_55 = arith.constant 0 : index
    %280 = vector.load %arg1[%c1_53, %c0_54, %c0_55] : memref<2x4x256xf32, #tpu.memory_space<vmem>>, vector<1x2x256xf32>
    %281 = vector.shape_cast %280 : vector<1x2x256xf32> to vector<2x256xf32>
    %c1_56 = arith.constant 1 : index
    %c0_57 = arith.constant 0 : index
    %c0_58 = arith.constant 0 : index
    %282 = vector.load %arg5[%c1_56, %c0_57, %c0_58] : memref<2x2x512xf32, #tpu.memory_space<vmem>>, vector<1x2x256xf32>
    %283 = vector.shape_cast %282 : vector<1x2x256xf32> to vector<2x256xf32>
    %284 = vector.shape_cast %281 : vector<2x256xf32> to vector<1x2x256xf32>
    tpu.vector_store %arg5[%c1_56, %c0_57, %c0_58], %284 {strides = array<i32>} : memref<2x2x512xf32, #tpu.memory_space<vmem>>, vector<1x2x256xf32>,
    %c1_59 = arith.constant 1 : index
    %c0_60 = arith.constant 0 : index
    %c256_61 = arith.constant 256 : index
    %285 = vector.load %arg5[%c1_59, %c0_60, %c256_61] : memref<2x2x512xf32, #tpu.memory_space<vmem>>, vector<1x2x256xf32>
    %286 = vector.shape_cast %285 : vector<1x2x256xf32> to vector<2x256xf32>
    %287 = vector.shape_cast %279 : vector<2x256xf32> to vector<1x2x256xf32>
    tpu.vector_store %arg5[%c1_59, %c0_60, %c256_61], %287 {strides = array<i32>} : memref<2x2x512xf32, #tpu.memory_space<vmem>>, vector<1x2x256xf32>,
    return
  }
  func.func @transform_0(%arg0: i32) -> (i32, i32, i32) {
    %c0_i32 = arith.constant 0 : i32
    %c0_i32_0 = arith.constant 0 : i32
    %c0_i32_1 = arith.constant 0 : i32
    return %arg0, %c0_i32, %c0_i32_0 : i32, i32, i32
  }
  func.func @transform_1(%arg0: i32) -> (i32, i32) {
    %c0_i32 = arith.constant 0 : i32
    %c0_i32_0 = arith.constant 0 : i32
    %c0_i32_1 = arith.constant 0 : i32
    return %c0_i32, %c0_i32_0 : i32, i32
  }
  func.func @transform_2(%arg0: i32) -> (i32, i32) {
    %c0_i32 = arith.constant 0 : i32
    %c0_i32_0 = arith.constant 0 : i32
    %c0_i32_1 = arith.constant 0 : i32
    return %c0_i32, %c0_i32_0 : i32, i32
  }
  func.func @transform_3(%arg0: i32) -> (i32, i32) {
    %c0_i32 = arith.constant 0 : i32
    %c0_i32_0 = arith.constant 0 : i32
    %c0_i32_1 = arith.constant 0 : i32
    return %c0_i32, %c0_i32_0 : i32, i32
  }
  func.func @transform_4(%arg0: i32) -> (i32, i32, i32) {
    %c0_i32 = arith.constant 0 : i32
    %c0_i32_0 = arith.constant 0 : i32
    %c0_i32_1 = arith.constant 0 : i32
    return %arg0, %c0_i32, %c0_i32_0 : i32, i32, i32
  }
}

</mosaic_0001>

<bundles_post_ra>
// kernel: tpu_custom_call.1
= control target key start
LH: loop header
LB: loop body
LE: loop exit
PB: predicated region body
PF: predicated region fallthrough
CT: control target
= control target key end

     0   :  { %9 = vsyncpa [#allocation3], 0  ;;  %s1171_s0 = inlined_call_operand.hbm [shape: f32[2,4,256], index: 0, kind: input, shape index: {}]   ;;  %s1172_s1 = inlined_call_operand.hbm [shape: f32[2,2], index: 1, kind: input, shape index: {}]   ;;  %s1173_s2 = inlined_call_operand.vmem [shape: f32[2,2], index: 2, kind: input, shape index: {}]   ;;  %s1174_s3 = inlined_call_operand.vmem [shape: f32[2,16], index: 3, kind: input, shape index: {}]   ;;  %s1175_s4 = inlined_call_operand.hbm [shape: f32[2,2,512], index: 4, kind: output, shape index: {}]  }
   0x1   :  { %10 = vsyncpa [#allocation6], 0 }
   0x2   :  { %11 = vsyncpa [#allocation4], 0  ;;  %s753_s15 = smov [#allocation2]  }
   0x3   :  { %s17_s16 = sshll.u32 %s753_s15, 4  ;;  %s18_s16 = int_to_ptr.vmem [resolvable:$true] %s17_s16 }
   0x4   :  { %s695_s17 = scalar_lea.vmem %s18_s16, 256  ;;  %p700_p1 = scmp.lt.s32.totalorder %s18_s16, %s18_s16 }
   0x5   :  { %p696_p0 = scmp.ne.s32.totalorder %s18_s16, %s695_s17  ;;  %p701_p2 = scmp.lt.s32.totalorder %s695_s17, %s695_s17 }
   0x7   :  { %p702_p3 = por %p701_p2, %p700_p1 }
   0x9   :  { %p703_p4 = pnand %p702_p3, %p696_p0 }
   0xb   :  { %706 = shalt.err (!%p703_p4)
}
   0xc   :  { %s754_s18 = smov 128   ;;  %s755_s19 = smov 8  }
   0xd   :  { %23 = dma.hbm_to_vmem [thread:$0]  %s1171_s0, 256, %s18_s16, [#allocation3], %s754_s18, %s754_s18, %s755_s19  }
   0xe   :  { %s756_s22 = smov [#allocation5]  }
   0xf   :  { %s30_s23 = sshll.u32 %s756_s22, 4  ;;  %s31_s23 = int_to_ptr.vmem [resolvable:$true] %s30_s23 }
  0x10   :  { %s715_s24 = scalar_lea.vmem %s31_s23, 32  ;;  %p720_p6 = scmp.lt.s32.totalorder %s31_s23, %s31_s23 }
  0x11   :  { %p716_p5 = scmp.ne.s32.totalorder %s31_s23, %s715_s24  ;;  %p721_p7 = scmp.lt.s32.totalorder %s715_s24, %s715_s24 }
  0x13   :  { %p722_p8 = por %p721_p7, %p720_p6 }
  0x15   :  { %p723_p9 = pnand %p722_p8, %p716_p5 }
  0x17   :  { %726 = shalt.err (!%p723_p9)
}
  0x18   :  { %33 = dma.hbm_to_vmem [thread:$0]  %s1172_s1, 32, %s31_s23, [#allocation6]  }
  0x19   :  { %747 = dma.done.wait [#allocation3], 256  }
  0x1a   :  { %748 = vsyncadd [#allocation3], 4294967040 }
  0x1b   :  { %749 = dma.done.wait [#allocation6], 32  }
  0x1c   :  { %750 = vsyncadd [#allocation6], 4294967264  ;;  %v757_v0 = vmov 0   ;;  %v79_v1 = vld [vmem:[#allocation5] sm:$0x3]  ;;  %v758_v3 = vmov 1   ;;  %v44_v15 = vlaneseq }
  0x1d   :  { %667 = vset.pattern.permute.xlu0 %v757_v0  ;;  %669 = vset.pattern.permute.xlu1 %v757_v0  ;;  %v820_v2 = vld [vmem:[%s1174_s3] sm:$0x3]  ;;  %v759_v4 = vmov 10   ;;  %v760_v5 = vmov 6   ;;  %v761_v6 = vmov 7   ;;  %v762_v7 = vmov 8  }
  0x1e   :  { %85 = vperm.xlu0 %667, %v79_v1   ;;  %137 = vperm.xlu1 %669, %v820_v2   ;;  %v763_v8 = vmov 9   ;;  %v764_v9 = vmov 11   ;;  %v765_v10 = vmov 12   ;;  %v766_v11 = vmov 13   ;;  %v82_v19 = vld [vmem:[#allocation2] sm:$0xcc] }
  0x1f   :  { %v767_v12 = vmov 14   ;;  %v768_v13 = vmov 2   ;;  %v769_v14 = vmov 3   ;;  %v836_v16 = vshrl.u32 %v44_v15, 7  ;;  %v413_v22 = vld [vmem:[#allocation2 + $0x8] sm:$0xcc] }
  0x20   :  { %s770_s1 = smov 17   ;;  %s771_s3 = smov 16  }
  0x21   :  { %v91_v17 = vsub.s32 2, %v836_v16  ;;  %v95_v18 = vsub.s32 6, %v836_v16  ;;  %v115_v20 = vsub.s32 3, %v836_v16  ;;  %v119_v21 = vsub.s32 7, %v836_v16  ;;  %s772_s28 = smov 1   ;;  %s773_s29 = smov 15  }
  0x22   :  { %668 = vset.pattern.permute.xlu0 %v758_v3  ;;  %670 = vset.pattern.permute.xlu1 %v758_v3  ;;  %s774_s30 = smov 127   ;;  %s775_s5 = smov 113  }
  0x23   :  { %110 = vperm.xlu0 %668, %v79_v1   ;;  %143 = vperm.xlu1 %670, %v820_v2   ;;  %v92_v23 = vrot.slane %v82_v19, %v91_v17  ;;  %v96_v24 = vrot.slane %v82_v19, %v95_v18  ;;  %v418_v25 = vrot.slane %v413_v22, %v91_v17  ;;  %s776_s6 = smov 112   ;;  %s777_s7 = smov 111  }
  0x24   :  { %v116_v26 = vrot.slane %v82_v19, %v115_v20  ;;  %v120_v27 = vrot.slane %v82_v19, %v119_v21  ;;  %v438_v28 = vrot.slane %v413_v22, %v115_v20  ;;  %v442_v53 = vrot.slane %v413_v22, %v119_v21 }
  0x25   :  { %v102_v30 = vrot.slane %v92_v23, %v91_v17  ;;  %v106_v31 = vrot.slane %v96_v24, %v91_v17  ;;  %v428_v32 = vrot.slane %v418_v25, %v91_v17  ;;  %v422_v57 = vrot.slane %v413_v22, %v95_v18  ;;  %v635_v22 = vld.sshfl [vmem:[#allocation2] sm:$0xf pattern:$0x76325410] }
  0x26   :  { %v126_v33 = vrot.slane %v116_v26, %v115_v20  ;;  %v130_v34 = vrot.slane %v120_v27, %v115_v20  ;;  %v448_v35 = vrot.slane %v438_v28, %v115_v20  ;;  %v452_v58 = vrot.slane %v442_v53, %v115_v20  ;;  %399 = vst [vmem:[#allocation7] sm:$0xf] %v635_v22  ;;  %v637_v25 = vld.sshfl [vmem:[#allocation2 + $0x8] sm:$0xf pattern:$0x76325410] }
  0x27   :  { %671 = vset.pattern.permute.xlu1 %v759_v4  ;;  %672 = vset.pattern.permute.xlu0 %v760_v5  ;;  %v432_v60 = vrot.slane %v422_v57, %v91_v17  ;;  %v779_v17 = vmov 4   ;;  %604 = vst [vmem:[#allocation7 + $0x8] sm:$0xf] %v637_v25 }
  0x28   :  { %151 = vperm.xlu1 %671, %v820_v2   ;;  %172 = vperm.xlu0 %672, %v820_v2  }
  0x2c   :  { %673 = vset.pattern.permute.xlu0 %v761_v6  ;;  %681 = vset.pattern.permute.xlu1 %v769_v14  ;;  %v80_v6 = vld [vmem:[%s1173_s2] sm:$0x3]  ;;  %s780_s2 = smov [#allocation7]  }
  0x2d   :  { %193 = vperm.xlu0 %673, %v820_v2   ;;  %s622_s10 = sshll.u32 %s780_s2, 4  ;;  %s623_s10 = int_to_ptr.vmem [resolvable:$true] %s622_s10 }
  0x2e   :  { %s727_s11 = scalar_lea.vmem %s623_s10, 256  ;;  %p732_p11 = scmp.lt.s32.totalorder %s623_s10, %s623_s10 }
  0x2f   :  { %p728_p10 = scmp.ne.s32.totalorder %s623_s10, %s727_s11  ;;  %p733_p12 = scmp.lt.s32.totalorder %s727_s11, %s727_s11 }
  0x31   :  { %674 = vset.pattern.permute.xlu0 %v762_v7  ;;  %v778_v7 = vmov 5   ;;  %p734_p13 = por %p733_p12, %p732_p11 }
  0x32   :  { %216 = vperm.xlu0 %674, %v820_v2  }
  0x33   :  { %p735_p0 = pnand %p734_p13, %p728_p10 }
  0x36   :  { %675 = vset.pattern.permute.xlu0 %v763_v8 }
  0x37   :  { %237 = vperm.xlu0 %675, %v820_v2  }
  0x3b   :  { %676 = vset.pattern.permute.xlu0 %v764_v9 }
  0x3c   :  { %258 = vperm.xlu0 %676, %v820_v2  }
  0x40   :  { %677 = vset.pattern.permute.xlu0 %v765_v10 }
  0x41   :  { %281 = vperm.xlu0 %677, %v820_v2  }
  0x45   :  { %678 = vset.pattern.permute.xlu0 %v766_v11 }
  0x46   :  { %302 = vperm.xlu0 %678, %v820_v2  }
  0x4a   :  { %679 = vset.pattern.permute.xlu0 %v767_v12 }
  0x4b   :  { %325 = vperm.xlu0 %679, %v820_v2  }
  0x4f   :  { %680 = vset.pattern.permute.xlu0 %v768_v13  ;;  %v906_v13 = vand.u32 127, %v44_v15 }
  0x51   :  { %v912_v18 = vadd.s32 128, %v906_v13  ;;  %v51_v19 = vand.u32 15, %v906_v13  ;;  %vm75_vm1 = vcmp.ge.s32.totalorder %v906_v13, 16  ;;  %vm160_vm2 = vcmp.lt.s32.totalorder %v906_v13, 17 }
  0x52   :  { %vm183_vm5 = vcmp.lt.s32.totalorder %v906_v13, 16  ;;  %vm204_vm7 = vcmp.lt.s32.totalorder %v906_v13, 15  ;;  %vm227_vm10 = vcmp.lt.s32.totalorder %v906_v13, 1  ;;  %vm248_vm11 = vcmp.lt.s32.totalorder %v906_v13, 127 }
  0x53   :  { %vm921_vm0 = vcmp.gt.s32.totalorder %v51_v19, 0  ;;  %vm962_vm6 = vcmp.lt.s32.totalorder %v51_v19, 15  ;;  %vm78_vm12 = vcmp.lt.s32.totalorder %v912_v18, 240  ;;  %vm269_vm13 = vcmp.lt.s32.totalorder %v906_v13, 113 }
  0x54   :  { %vm935_vm4 = vmand %vm75_vm1, %vm921_vm0  ;;  %vm292_vm15 = vcmp.lt.s32.totalorder %v906_v13, 112 }
  0x55   :  { %vm975_vm9 = vmand %vm75_vm1, %vm962_vm6 }
  0x99   :  { %v86_v29 = vpop.permute.xlu0 %85  ;;  %v138_v36 = vpop.permute.xlu1 %137 }
  0x9a   :  { %v107_v37 = vmul.f32 %v102_v30, %v86_v29  ;;  %v108_v38 = vmul.f32 %v106_v31, %v86_v29  ;;  %v433_v40 = vmul.f32 %v428_v32, %v86_v29  ;;  %v434_v62 = vmul.f32 %v432_v60, %v86_v29 }
  0x9e   :  { %v111_v39 = vpop.permute.xlu0 %110  ;;  %v144_v47 = vpop.permute.xlu1 %143 }
  0x9f   :  { %v131_v41 = vmul.f32 %v126_v33, %v111_v39  ;;  %v132_v42 = vmul.f32 %v130_v34, %v111_v39  ;;  %v453_v43 = vmul.f32 %v448_v35, %v111_v39  ;;  %v454_v61 = vmul.f32 %v452_v58, %v111_v39 }
  0xa1   :  { %v133_v44 = vadd.f32 %v131_v41, %v107_v37  ;;  %v134_v45 = vadd.f32 %v132_v42, %v108_v38  ;;  %v455_v46 = vadd.f32 %v453_v43, %v433_v40  ;;  %v456_v63 = vadd.f32 %v454_v61, %v434_v62 }
  0xa3   :  { %v140_v48 = vmul.f32 %v138_v36, %v133_v44  ;;  %v141_v49 = vmul.f32 %v138_v36, %v134_v45  ;;  %v457_v50 = vmul.f32 %v455_v46, %v138_v36  ;;  %v458_v1 = vmul.f32 %v456_v63, %v138_v36  ;;  %v917_v21 = vpop.permute.xlu1 %151 }
  0xa5   :  { %v146_v51 = vadd.f32 %v144_v47, %v140_v48  ;;  %v147_v52 = vadd.f32 %v144_v47, %v141_v49  ;;  %v459_v56 = vadd.f32 %v457_v50, %v144_v47  ;;  %v460_v4 = vadd.f32 %v458_v1, %v144_v47 }
  0xa7   :  { %v842_v54 = vmax.f32 %v146_v51, 0.0  ;;  %v844_v55 = vmax.f32 %v147_v52, 0.0  ;;  %v848_v59 = vmax.f32 %v459_v56, 0.0  ;;  %v861_v5 = vmax.f32 %v460_v4, 0.0 }
  0xa9   :  { %158 = vrot.lane.b32.xlu1 %v844_v55, %s770_s1  ;;  %156 = vrot.lane.b32.xlu0 %v842_v54, %s770_s1  ;;  %v155_v34 = vmul.f32 %v917_v21, %v844_v55  ;;  %v154_v36 = vmul.f32 %v917_v21, %v842_v54  ;;  %v463_v1 = vmul.f32 %v848_v59, %v917_v21 }
  0xad   :  { %179 = vrot.lane.b32.xlu1 %v842_v54, %s771_s3  ;;  %477 = vrot.lane.b32.xlu0 %v848_v59, %s771_s3 }
  0xb1   :  { %181 = vrot.lane.b32.xlu1 %v844_v55, %s771_s3  ;;  %501 = vrot.lane.b32.xlu0 %v848_v59, %s772_s28 }
  0xb5   :  { %200 = vrot.lane.b32.xlu1 %v842_v54, %s773_s29  ;;  %513 = vrot.lane.b32.xlu0 %v848_v59, %s774_s30 }
  0xb9   :  { %202 = vrot.lane.b32.xlu1 %v844_v55, %s773_s29  ;;  %525 = vrot.lane.b32.xlu0 %v848_v59, %s775_s5 }
  0xbd   :  { %465 = vrot.lane.b32.xlu1 %v848_v59, %s770_s1  ;;  %537 = vrot.lane.b32.xlu0 %v848_v59, %s776_s6 }
  0xc1   :  { %467 = vrot.lane.b32.xlu1 %v861_v5, %s770_s1  ;;  %309 = vrot.lane.b32.xlu0 %v842_v54, %s777_s7 }
  0xc5   :  { %479 = vrot.lane.b32.xlu1 %v861_v5, %s771_s3  ;;  %549 = vrot.lane.b32.xlu0 %v848_v59, %s777_s7 }
  0xc9   :  { %489 = vrot.lane.b32.xlu1 %v848_v59, %s773_s29  ;;  %333 = vperm.xlu0 %680, %v820_v2  }
  0xcd   :  { %491 = vrot.lane.b32.xlu1 %v861_v5, %s773_s29  ;;  %683 = vset.pattern.permute.xlu0 %v758_v3  ;;  %v884_v3 = vpop.permute.xlu0 %172 }
  0xce   :  { %360 = vperm.xlu0 %683, %v80_v6  }
  0xd1   :  { %223 = vrot.lane.b32.xlu1 %v842_v54, %s772_s28  ;;  %v888_v8 = vpop.permute.xlu0 %193 }
  0xd2   :  { %686 = vset.pattern.permute.xlu0 %v778_v7 }
  0xd5   :  { %225 = vrot.lane.b32.xlu1 %v844_v55, %s772_s28  ;;  %v891_v9 = vpop.permute.xlu0 %216 }
  0xd9   :  { %503 = vrot.lane.b32.xlu1 %v861_v5, %s772_s28  ;;  %v895_v10 = vpop.permute.xlu0 %237 }
  0xdd   :  { %244 = vrot.lane.b32.xlu1 %v842_v54, %s774_s30  ;;  %v898_v11 = vpop.permute.xlu0 %258 }
  0xe1   :  { %246 = vrot.lane.b32.xlu1 %v844_v55, %s774_s30  ;;  %v902_v12 = vpop.permute.xlu0 %281 }
  0xe5   :  { %515 = vrot.lane.b32.xlu1 %v861_v5, %s774_s30  ;;  %v908_v14 = vpop.permute.xlu0 %302 }
  0xe9   :  { %265 = vrot.lane.b32.xlu1 %v842_v54, %s775_s5  ;;  %v915_v20 = vpop.permute.xlu0 %325 }
  0xed   :  { %267 = vrot.lane.b32.xlu1 %v844_v55, %s775_s5 }
  0xf1   :  { %527 = vrot.lane.b32.xlu1 %v861_v5, %s775_s5 }
  0xf5   :  { %288 = vrot.lane.b32.xlu1 %v842_v54, %s776_s6 }
  0xf9   :  { %290 = vrot.lane.b32.xlu1 %v844_v55, %s776_s6 }
  0xfd   :  { %539 = vrot.lane.b32.xlu1 %v861_v5, %s776_s6 }
 0x101   :  { %311 = vrot.lane.b32.xlu1 %v844_v55, %s777_s7 }
 0x105   :  { %551 = vrot.lane.b32.xlu1 %v861_v5, %s777_s7 }
 0x109   :  { %339 = vperm.xlu1 %681, %v820_v2  }
 0x10d   :  { %682 = vset.pattern.permute.xlu1 %v757_v0  ;;  %v58_v0 = vand.u32 15, %v912_v18 }
 0x10e   :  { %346 = vperm.xlu1 %682, %v80_v6  }
 0x10f   :  { %vm927_vm3 = vcmp.gt.s32.totalorder %v58_v0, 0  ;;  %vm967_vm8 = vcmp.lt.s32.totalorder %v58_v0, 15 }
 0x110   :  { %vm1062_vm14 = vmand %vm78_vm12, %vm927_vm3 }
 0x112   :  { %684 = vset.pattern.permute.xlu1 %v779_v17 }
 0x113   :  { %376 = vperm.xlu1 %684, %v820_v2  }
 0x117   :  { %685 = vset.pattern.permute.xlu1 %v778_v7 }
 0x118   :  { %382 = vperm.xlu1 %685, %v820_v2  }
 0x11b   :  { %v159_v23 = vpop.permute.xlu1 %158  ;;  %v157_v26 = vpop.permute.xlu0 %156 }
 0x11c   :  { %v161_v27 = vsel %vm160_vm2, %v157_v26, %v159_v23  ;;  %v162_v28 = vsel %vm160_vm2, %v159_v23, %v157_v26 }
 0x11d   :  { %v169_v29 = vsel %vm935_vm4, %v162_v28, 0.0  ;;  %v170_v30 = vsel %vm927_vm3, %v161_v27, 0.0 }
 0x11e   :  { %v176_v32 = vmul.f32 %v884_v3, %v170_v30  ;;  %v175_v33 = vmul.f32 %v884_v3, %v169_v29 }
 0x11f   :  { %v180_v31 = vpop.permute.xlu1 %179  ;;  %v1002_v6 = vpop.permute.xlu0 %477 }
 0x120   :  { %v178_v39 = vadd.f32 %v176_v32, %v155_v34  ;;  %v177_v42 = vadd.f32 %v175_v33, %v154_v36 }
 0x123   :  { %v182_v35 = vpop.permute.xlu1 %181 }
 0x124   :  { %v184_v37 = vsel %vm183_vm5, %v180_v31, %v182_v35  ;;  %v185_v38 = vsel %vm183_vm5, %v182_v35, %v180_v31 }
 0x125   :  { %v190_v40 = vsel %vm75_vm1, %v185_v38, 0.0  ;;  %v197_v41 = vmul.f32 %v888_v8, %v184_v37  ;;  %v502_v37 = vpop.permute.xlu0 %501 }
 0x126   :  { %v196_v43 = vmul.f32 %v888_v8, %v190_v40 }
 0x127   :  { %v199_v44 = vadd.f32 %v197_v41, %v178_v39  ;;  %v201_v45 = vpop.permute.xlu1 %200 }
 0x128   :  { %v198_v47 = vadd.f32 %v196_v43, %v177_v42 }
 0x12b   :  { %v203_v50 = vpop.permute.xlu1 %202 }
 0x12c   :  { %v205_v51 = vsel %vm204_vm7, %v201_v45, %v203_v50  ;;  %v206_v52 = vsel %vm204_vm7, %v203_v50, %v201_v45 }
 0x12d   :  { %v213_v53 = vsel %vm975_vm9, %v206_v52, 0.0  ;;  %v214_v54 = vsel %vm967_vm8, %v205_v51, 0.0 }
 0x12e   :  { %v219_v55 = vmul.f32 %v891_v9, %v213_v53  ;;  %v220_v56 = vmul.f32 %v891_v9, %v214_v54 }
 0x12f   :  { %v989_v57 = vpop.permute.xlu1 %465 }
 0x130   :  { %v221_v58 = vadd.f32 %v219_v55, %v198_v47  ;;  %v222_v60 = vadd.f32 %v220_v56, %v199_v44  ;;  %v514_v55 = vpop.permute.xlu0 %513 }
 0x133   :  { %v991_v61 = vpop.permute.xlu1 %467 }
 0x134   :  { %v470_v62 = vsel %vm160_vm2, %v991_v61, %v989_v57 }
 0x135   :  { %v471_v63 = vsel %vm935_vm4, %v470_v62, 0.0 }
 0x136   :  { %v473_v4 = vmul.f32 %v471_v63, %v884_v3 }
 0x137   :  { %v1004_v7 = vpop.permute.xlu1 %479 }
 0x138   :  { %v475_v17 = vadd.f32 %v473_v4, %v463_v1  ;;  %v482_v19 = vsel %vm183_vm5, %v1004_v7, %v1002_v6  ;;  %v481_v15 = vsel %vm183_vm5, %v1002_v6, %v1004_v7 }
 0x139   :  { %v483_v0 = vsel %vm75_vm1, %v482_v19, 0.0  ;;  %vm1129_vm1 = vmand %vm78_vm12, %vm967_vm8 }
 0x13a   :  { %v485_v22 = vmul.f32 %v483_v0, %v888_v8 }
 0x13b   :  { %v1013_v23 = vpop.permute.xlu1 %489 }
 0x13c   :  { %v487_v59 = vadd.f32 %v485_v22, %v475_v17 }
 0x13f   :  { %v1015_v2 = vpop.permute.xlu1 %491 }
 0x140   :  { %v494_v25 = vsel %vm204_vm7, %v1015_v2, %v1013_v23 }
 0x141   :  { %v495_v26 = vsel %vm975_vm9, %v494_v25, 0.0 }
 0x142   :  { %v497_v27 = vmul.f32 %v495_v26, %v891_v9 }
 0x143   :  { %v224_v28 = vpop.permute.xlu1 %223 }
 0x144   :  { %v499_v29 = vadd.f32 %v497_v27, %v487_v59 }
 0x147   :  { %v226_v30 = vpop.permute.xlu1 %225 }
 0x148   :  { %v228_v31 = vsel %vm227_vm10, %v224_v28, %v226_v30  ;;  %v229_v32 = vsel %vm227_vm10, %v226_v30, %v224_v28 }
 0x149   :  { %v234_v33 = vsel %vm921_vm0, %v229_v32, 0.0  ;;  %v235_v34 = vsel %vm927_vm3, %v228_v31, 0.0 }
 0x14a   :  { %v240_v35 = vmul.f32 %v895_v10, %v234_v33  ;;  %v241_v36 = vmul.f32 %v895_v10, %v235_v34  ;;  %v469_v34 = vsel %vm160_vm2, %v989_v57, %v991_v61  ;;  %v493_v57 = vsel %vm204_vm7, %v1013_v23, %v1015_v2 }
 0x14b   :  { %v504_v38 = vpop.permute.xlu1 %503  ;;  %v496_v6 = vsel %vm967_vm8, %v493_v57, 0.0 }
 0x14c   :  { %v242_v39 = vadd.f32 %v240_v35, %v221_v58  ;;  %v243_v40 = vadd.f32 %v241_v36, %v222_v60  ;;  %v506_v41 = vsel %vm227_vm10, %v504_v38, %v502_v37 }
 0x14d   :  { %v507_v42 = vsel %vm921_vm0, %v506_v41, 0.0 }
 0x14e   :  { %v509_v43 = vmul.f32 %v507_v42, %v895_v10 }
 0x14f   :  { %v245_v44 = vpop.permute.xlu1 %244 }
 0x150   :  { %v511_v45 = vadd.f32 %v509_v43, %v499_v29  ;;  %v526_v29 = vpop.permute.xlu0 %525 }
 0x153   :  { %v247_v47 = vpop.permute.xlu1 %246 }
 0x154   :  { %v249_v49 = vsel %vm248_vm11, %v245_v44, %v247_v47  ;;  %v250_v50 = vsel %vm248_vm11, %v247_v47, %v245_v44  ;;  %v538_v42 = vpop.permute.xlu0 %537  ;;  %v505_v47 = vsel %vm227_vm10, %v502_v37, %v504_v38 }
 0x155   :  { %v255_v51 = vsel %vm962_vm6, %v249_v49, 0.0  ;;  %v256_v52 = vsel %vm967_vm8, %v250_v50, 0.0  ;;  %v486_v50 = vmul.f32 %v481_v15, %v888_v8  ;;  %v508_v37 = vsel %vm927_vm3, %v505_v47, 0.0 }
 0x156   :  { %v261_v53 = vmul.f32 %v898_v11, %v255_v51  ;;  %v262_v54 = vmul.f32 %v898_v11, %v256_v52 }
 0x157   :  { %v516_v56 = vpop.permute.xlu1 %515 }
 0x158   :  { %v263_v58 = vadd.f32 %v261_v53, %v242_v39  ;;  %v264_v60 = vadd.f32 %v262_v54, %v243_v40  ;;  %v517_v62 = vsel %vm248_vm11, %v514_v55, %v516_v56  ;;  %v472_v40 = vsel %vm927_vm3, %v469_v34, 0.0  ;;  %v310_v53 = vpop.permute.xlu0 %309 }
 0x159   :  { %v519_v63 = vsel %vm962_vm6, %v517_v62, 0.0  ;;  %v474_v43 = vmul.f32 %v472_v40, %v884_v3  ;;  %v464_v3 = vmul.f32 %v861_v5, %v917_v21  ;;  %v518_v51 = vsel %vm248_vm11, %v516_v56, %v514_v55 }
 0x15a   :  { %v521_v1 = vmul.f32 %v519_v63, %v898_v11  ;;  %v498_v54 = vmul.f32 %v496_v6, %v891_v9  ;;  %v520_v55 = vsel %vm967_vm8, %v518_v51, 0.0  ;;  %v510_v9 = vmul.f32 %v508_v37, %v895_v10 }
 0x15b   :  { %v266_v4 = vpop.permute.xlu1 %265  ;;  %v476_v49 = vadd.f32 %v474_v43, %v464_v3 }
 0x15c   :  { %v523_v17 = vadd.f32 %v521_v1, %v511_v45 }
 0x15d   :  { %v488_v56 = vadd.f32 %v486_v50, %v476_v49 }
 0x15f   :  { %v268_v0 = vpop.permute.xlu1 %267 }
 0x160   :  { %v270_v22 = vsel %vm269_vm13, %v266_v4, %v268_v0  ;;  %v271_v59 = vsel %vm269_vm13, %v268_v0, %v266_v4  ;;  %v522_v0 = vmul.f32 %v520_v55, %v898_v11 }
 0x161   :  { %v278_v25 = vsel %vm921_vm0, %v270_v22, 0.0  ;;  %v279_v26 = vsel %vm1062_vm14, %v271_v59, 0.0 }
 0x162   :  { %v284_v27 = vmul.f32 %v902_v12, %v278_v25  ;;  %v285_v28 = vmul.f32 %v902_v12, %v279_v26  ;;  %v550_v26 = vpop.permute.xlu0 %549 }
 0x163   :  { %v528_v30 = vpop.permute.xlu1 %527 }
 0x164   :  { %v286_v31 = vadd.f32 %v284_v27, %v263_v58  ;;  %v287_v32 = vadd.f32 %v285_v28, %v264_v60  ;;  %v529_v33 = vsel %vm269_vm13, %v526_v29, %v528_v30  ;;  %v530_v58 = vsel %vm269_vm13, %v528_v30, %v526_v29 }
 0x165   :  { %v531_v35 = vsel %vm921_vm0, %v529_v33, 0.0  ;;  %vm313_vm0 = vcmp.lt.s32.totalorder %v906_v13, 111  ;;  %v532_v1 = vsel %vm1062_vm14, %v530_v58, 0.0  ;;  %v365_v13 = vsub.s32 1, %v836_v16 }
 0x166   :  { %v533_v36 = vmul.f32 %v531_v35, %v902_v12  ;;  %v534_v28 = vmul.f32 %v532_v1, %v902_v12  ;;  %v334_v43 = vpop.permute.xlu0 %333 }
 0x167   :  { %v289_v39 = vpop.permute.xlu1 %288 }
 0x168   :  { %v535_v41 = vadd.f32 %v533_v36, %v523_v17  ;;  %v500_v17 = vadd.f32 %v498_v54, %v488_v56 }
 0x16a   :  { %v512_v27 = vadd.f32 %v510_v9, %v500_v17 }
 0x16b   :  { %v291_v61 = vpop.permute.xlu1 %290 }
 0x16c   :  { %v293_v44 = vsel %vm292_vm15, %v289_v39, %v291_v61  ;;  %v294_v45 = vsel %vm292_vm15, %v291_v61, %v289_v39  ;;  %v524_v33 = vadd.f32 %v522_v0, %v512_v27 }
 0x16d   :  { %v300_v23 = vsel %vm78_vm12, %v294_v45, 0.0  ;;  %v305_v2 = vmul.f32 %v908_v14, %v293_v44  ;;  %v351_v44 = vsub.s32 0, %v836_v16 }
 0x16e   :  { %v306_v7 = vmul.f32 %v908_v14, %v300_v23  ;;  %v536_v36 = vadd.f32 %v534_v28, %v524_v33 }
 0x16f   :  { %v307_v5 = vadd.f32 %v305_v2, %v286_v31  ;;  %v540_v21 = vpop.permute.xlu1 %539  ;;  %v361_v2 = vpop.permute.xlu0 %360 }
 0x170   :  { %v308_v38 = vadd.f32 %v306_v7, %v287_v32  ;;  %v541_v52 = vsel %vm292_vm15, %v538_v42, %v540_v21  ;;  %v542_v60 = vsel %vm292_vm15, %v540_v21, %v538_v42 }
 0x171   :  { %v545_v8 = vmul.f32 %v541_v52, %v908_v14  ;;  %v544_v59 = vsel %vm78_vm12, %v542_v60, 0.0 }
 0x172   :  { %v546_v18 = vmul.f32 %v544_v59, %v908_v14 }
 0x173   :  { %v547_v62 = vadd.f32 %v545_v8, %v535_v41  ;;  %v312_v63 = vpop.permute.xlu1 %311 }
 0x174   :  { %v314_v48 = vsel %vm313_vm0, %v310_v53, %v312_v63  ;;  %v315_v4 = vsel %vm313_vm0, %v312_v63, %v310_v53  ;;  %v548_v41 = vadd.f32 %v546_v18, %v536_v36 }
 0x175   :  { %v322_v10 = vsel %vm962_vm6, %v314_v48, 0.0  ;;  %v323_v22 = vsel %vm1129_vm1, %v315_v4, 0.0 }
 0x176   :  { %v328_v19 = vmul.f32 %v915_v20, %v322_v10  ;;  %v329_v25 = vmul.f32 %v915_v20, %v323_v22 }
 0x177   :  { %v552_v29 = vpop.permute.xlu1 %551 }
 0x178   :  { %v330_v30 = vadd.f32 %v328_v19, %v307_v5  ;;  %v331_v11 = vadd.f32 %v329_v25, %v308_v38  ;;  %v553_v31 = vsel %vm313_vm0, %v550_v26, %v552_v29  ;;  %v554_v32 = vsel %vm313_vm0, %v552_v29, %v550_v26 }
 0x179   :  { %v555_v34 = vsel %vm962_vm6, %v553_v31, 0.0  ;;  %v556_v35 = vsel %vm1129_vm1, %v554_v32, 0.0 }
 0x17a   :  { %v557_v12 = vmul.f32 %v555_v34, %v915_v20  ;;  %v558_v39 = vmul.f32 %v556_v35, %v915_v20  ;;  %v336_v57 = vmul.f32 %v334_v43, %v330_v30  ;;  %v337_v61 = vmul.f32 %v334_v43, %v331_v11 }
 0x17c   :  { %v559_v40 = vadd.f32 %v557_v12, %v547_v62  ;;  %v560_v42 = vadd.f32 %v558_v39, %v548_v41 }
 0x17e   :  { %v561_v14 = vmul.f32 %v559_v40, %v334_v43  ;;  %v562_v15 = vmul.f32 %v560_v42, %v334_v43 }
 0x184   :  { %v340_v46 = vpop.permute.xlu1 %339 }
 0x185   :  { %v342_v45 = vadd.f32 %v340_v46, %v336_v57  ;;  %v343_v3 = vadd.f32 %v340_v46, %v337_v61  ;;  %v563_v47 = vadd.f32 %v561_v14, %v340_v46  ;;  %v564_v23 = vadd.f32 %v562_v15, %v340_v46 }
 0x187   :  { %v366_v6 = vrot.slane %v342_v45, %v365_v13  ;;  %v370_v20 = vrot.slane %v343_v3, %v365_v13  ;;  %v578_v7 = vrot.slane %v563_v47, %v365_v13  ;;  %v582_v49 = vrot.slane %v564_v23, %v365_v13 }
 0x188   :  { %v352_v50 = vrot.slane %v342_v45, %v351_v44  ;;  %v356_v51 = vrot.slane %v343_v3, %v351_v44  ;;  %v568_v5 = vrot.slane %v563_v47, %v351_v44  ;;  %v572_v21 = vrot.slane %v564_v23, %v351_v44 }
 0x189   :  { %v371_v37 = vmul.f32 %v366_v6, %v361_v2  ;;  %v372_v38 = vmul.f32 %v370_v20, %v361_v2  ;;  %v583_v52 = vmul.f32 %v578_v7, %v361_v2  ;;  %v584_v53 = vmul.f32 %v582_v49, %v361_v2  ;;  %v347_v54 = vpop.permute.xlu1 %346 }
 0x18a   :  { %v357_v58 = vmul.f32 %v352_v50, %v347_v54  ;;  %v358_v16 = vmul.f32 %v356_v51, %v347_v54  ;;  %v573_v8 = vmul.f32 %v568_v5, %v347_v54  ;;  %v574_v55 = vmul.f32 %v572_v21, %v347_v54 }
 0x18c   :  { %v373_v56 = vadd.f32 %v371_v37, %v357_v58  ;;  %v374_v9 = vadd.f32 %v372_v38, %v358_v16  ;;  %v585_v60 = vadd.f32 %v583_v52, %v573_v8  ;;  %v586_v62 = vadd.f32 %v584_v53, %v574_v55 }
 0x18e   :  { %v377_v24 = vpop.permute.xlu1 %376 }
 0x18f   :  { %v379_v63 = vmul.f32 %v377_v24, %v373_v56  ;;  %v380_v1 = vmul.f32 %v377_v24, %v374_v9  ;;  %v587_v48 = vmul.f32 %v585_v60, %v377_v24  ;;  %v588_v4 = vmul.f32 %v586_v62, %v377_v24 }
 0x193   :  { %v383_v17 = vpop.permute.xlu1 %382 }
 0x194   :  { %v385_v0 = vadd.f32 %v383_v17, %v379_v63  ;;  %v386_v10 = vadd.f32 %v383_v17, %v380_v1  ;;  %v589_v22 = vadd.f32 %v587_v48, %v383_v17  ;;  %v590_v59 = vadd.f32 %v588_v4, %v383_v17 }
 0x196   :  { %v387_v19 = vmax.f32 %v385_v0, 0.0  ;;  %v388_v25 = vmax.f32 %v386_v10, 0.0  ;;  %v591_v26 = vmax.f32 %v589_v22, 0.0  ;;  %v592_v27 = vmax.f32 %v590_v59, 0.0 }
 0x198   :  { %v402_v28 = vcombine.low %v387_v19, %v388_v25  ;;  %v607_v29 = vcombine.low %v591_v26, %v592_v27 }
 0x19a   :  { %636 = vst.sshfl [vmem:[#allocation7 + $0x4] sm:$0x33 pattern:$0x76325410] %v402_v28 }
 0x19b   :  { %638 = vst.sshfl [vmem:[#allocation7 + $0xc] sm:$0x33 pattern:$0x76325410] %v607_v29 }
 0x19c   :  { %738 = shalt.err (!%p735_p0)
}
 0x19d   :  { %628 = dma.vmem_to_hbm [thread:$0]  %s623_s10, 256, %s1175_s4, [#allocation4], %s754_s18, %s754_s18, %s755_s19  }
 0x19e   :  { %751 = dma.done.wait [#allocation4], 256  }
 0x19f   :  { %752 = vsyncadd [#allocation4], 4294967040 }
 0x1a0   :  { %632 = vsyncpa [#allocation3], 1 }
 0x1a1   :  { %633 = vsyncpa [#allocation6], 1 }
 0x1a2   :  { %634 = vsyncpa [#allocation4], 1 }

</bundles_post_ra>
